<compile_context>
chip_gen: v7x
topology: tpu7x:2x2x1
jax: 0.10.0
libtpu: 0.0.40
codegen_flags: <defaults>
</compile_context>

<pallas_src>
import jax
import jax.numpy as jnp
from jax.experimental import pallas as pl
from jax.experimental.pallas import tpu as pltpu


def _make_kernel(mxu_dtype):
    def kernel(x_ref, w_ref, o_ref, acc_ref):
        # x_ref  : (tk, HW)        activation chunk (channels on sublanes, pixels on lanes)
        # w_ref  : (cout_blk, tk)  scale-folded weight tile, already in mxu_dtype
        # o_ref  : (cout_blk, HW)  output tile (revisited across the K axis)
        # acc_ref: (cout_blk, HW)  f32 accumulator scratch
        k = pl.program_id(2)

        @pl.when(k == 0)
        def _init():
            acc_ref[...] = jnp.zeros_like(acc_ref)

        x = x_ref[...].astype(mxu_dtype)      # no-op when the producer stores mxu_dtype
        acc_ref[...] += jnp.dot(w_ref[...], x, preferred_element_type=jnp.float32)

        @pl.when(k == pl.num_programs(2) - 1)
        def _store():
            o_ref[...] = acc_ref[...].astype(o_ref.dtype)

    return kernel


def _pick_k_chunks(cin: int) -> int:
    # ~3 chunks pipelines the HBM DMA against compute without paying too much
    # of the ~0.35us/grid-step fixed overhead.  Chunk size stays a multiple of
    # 16 so both f32 and bf16 sublane tiling are satisfied.
    for kc in (3, 4, 2, 5, 6):
        if cin % kc == 0 and (cin // kc) % 16 == 0:
            return kc
    return 1


def _default_cout_splits(cout: int, n_batch: int) -> int:
    # v7x has two TensorCores per chip; with N == 1 a single "parallel" batch
    # step leaves one idle.  Splitting Cout duplicates the x read, which
    # v7x's ~3.2 TB/s HBM absorbs; on single-TC v5e/v6e it only adds traffic,
    # so keep 1 there.
    try:
        kind = jax.devices()[0].device_kind.lower().replace(" ", "")
    except Exception:
        return 1
    if "v7" in kind and n_batch < 2 and cout % 32 == 0:
        return 2
    return 1


def mul_conv1x1(
    x_nchw,
    scale,
    weight_oi11,
    *,
    mxu_dtype=jnp.bfloat16,
    cout_splits=None,
    k_chunks=None,
    x_buffers: int = 2,
):
    """Fused (x * per-channel scale) -> 1x1 conv (no bias). NCHW in / NCHW out.

    x_nchw      : (N, Cin, H, W)
    scale       : (1, Cin, 1, 1) batch-invariant per-channel scale
    weight_oi11 : (Cout, Cin, 1, 1)
    mxu_dtype   : MXU operand dtype (weight stored in HBM in this dtype,
                  activations cast in-kernel if needed).  Default bf16 with
                  f32 accumulation; pass jnp.float32 for a full-precision path.
    """
    N, Cin, H, W = x_nchw.shape
    Cout = weight_oi11.shape[0]
    HW = H * W
    if weight_oi11.shape[1] != Cin:
        raise ValueError("weight Cin does not match activation Cin")
    if scale.size != Cin:
        raise ValueError(
            "only a batch-invariant per-channel scale of size Cin is supported"
        )

    mxu_dtype = jnp.dtype(mxu_dtype)

    if k_chunks is None:
        k_chunks = _pick_k_chunks(Cin)
    if Cin % k_chunks:
        raise ValueError("k_chunks must divide Cin")
    tk = Cin // k_chunks

    if cout_splits is None:
        cout_splits = _default_cout_splits(Cout, N)
    if Cout % cout_splits:
        raise ValueError("cout_splits must divide Cout")
    cb = Cout // cout_splits

    # --- activations: pure view reshape, no transpose / HBM copy ------------
    x_cm = x_nchw.reshape(N, Cin, HW)

    # --- one-time parameter prep: fold scale, retile, cast (one fused op) ---
    w_fold = weight_oi11.reshape(Cout, Cin).astype(jnp.float32) * scale.reshape(
        1, Cin
    ).astype(jnp.float32)
    w_prep = (
        w_fold.reshape(cout_splits, cb, k_chunks, tk)
        .transpose(0, 2, 1, 3)  # (co, k, cb, tk): each (co,k) tile is (cb, tk)
        .astype(mxu_dtype)
    )

    out_dtype = x_nchw.dtype
    cost = pl.CostEstimate(
        flops=2 * N * Cout * Cin * HW,
        transcendentals=0,
        bytes_accessed=(
            x_cm.size * x_cm.dtype.itemsize * cout_splits
            + w_prep.size * w_prep.dtype.itemsize
            + N * Cout * HW * jnp.dtype(out_dtype).itemsize
        ),
    )

    x_spec_kwargs = {}
    if x_buffers != 2:
        # Deeper pipelining of the activation stream (useful on v7x).
        x_spec_kwargs["pipeline_mode"] = pl.Buffered(x_buffers)

    out = pl.pallas_call(
        _make_kernel(mxu_dtype),
        out_shape=jax.ShapeDtypeStruct((N, Cout, HW), out_dtype),
        grid=(N, cout_splits, k_chunks),
        in_specs=[
            pl.BlockSpec((None, tk, HW), lambda n, co, k: (n, k, 0), **x_spec_kwargs),
            pl.BlockSpec((None, None, cb, tk), lambda n, co, k: (co, k, 0, 0)),
        ],
        out_specs=pl.BlockSpec((None, cb, HW), lambda n, co, k: (n, co, 0)),
        scratch_shapes=[pltpu.VMEM((cb, HW), jnp.float32)],
        compiler_params=pltpu.CompilerParams(
            dimension_semantics=("parallel", "parallel", "arbitrary"),
        ),
        cost_estimate=cost,
    )(x_cm, w_prep)

    return out.reshape(N, Cout, H, W)


if __name__ == "__main__":
    key = jax.random.PRNGKey(0)
    k1, k2, k3 = jax.random.split(key, 3)

    N, Cin, H, W, Cout = 1, 960, 14, 14, 160

    x372 = jax.random.normal(k1, (N, Cin, H, W), dtype=jnp.float32)
    x377 = jax.random.normal(k2, (1, Cin, 1, 1), dtype=jnp.float32)
    weight = (
        jax.random.normal(k3, (Cout, Cin, 1, 1), dtype=jnp.float32) * (1.0 / Cin) ** 0.5
    )

    # ---- full-precision path (module semantics, strict check) --------------
    out_f32 = jax.block_until_ready(
        mul_conv1x1(x372, x377, weight, mxu_dtype=jnp.float32)
    )
    ref_f32 = jnp.einsum(
        "nchw,oc->nohw",
        x372 * x377,
        weight.reshape(Cout, Cin),
        precision=jax.lax.Precision.HIGHEST,
    )
    assert out_f32.shape == (N, Cout, H, W), out_f32.shape
    assert jnp.allclose(out_f32, ref_f32, atol=2e-3, rtol=2e-3), float(
        jnp.max(jnp.abs(out_f32 - ref_f32))
    )

    # ---- bf16-resident path (producer stores activations in bf16) ----------
    x_bf = x372.astype(jnp.bfloat16)
    s_bf = x377.astype(jnp.bfloat16)
    out_bf = jax.block_until_ready(mul_conv1x1(x_bf, s_bf, weight))  # default bf16 MXU
    w_fold_ref = (
        weight.reshape(Cout, Cin) * s_bf.reshape(1, Cin).astype(jnp.float32)
    ).astype(jnp.bfloat16)
    ref_bf = jnp.einsum(
        "nchw,oc->nohw",
        x_bf.astype(jnp.float32),
        w_fold_ref.astype(jnp.float32),
        precision=jax.lax.Precision.HIGHEST,
    )
    assert out_bf.shape == (N, Cout, H, W), out_bf.shape
    assert jnp.allclose(
        out_bf.astype(jnp.float32), ref_bf, atol=2e-2, rtol=2e-2
    ), float(jnp.max(jnp.abs(out_bf.astype(jnp.float32) - ref_bf)))

    print("KERNEL_OK")
</pallas_src>

<mosaic_0001>
module attributes {stable_mosaic.version = 11 : i64} {
  func.func @kernel(%arg0: i32, %arg1: i32, %arg2: i32, %arg3: memref<1x320x196xf32, #tpu.memory_space<vmem>>, %arg4: memref<1x1x160x320xf32, #tpu.memory_space<vmem>>, %arg5: memref<1x160x196xf32, #tpu.memory_space<vmem>>, %arg6: memref<160x196xf32, #tpu.memory_space<vmem>>) attributes {dimension_semantics = [#tpu.dimension_semantics<parallel>, #tpu.dimension_semantics<parallel>, #tpu.dimension_semantics<arbitrary>], iteration_bounds = array<i64: 1, 1, 3>, scalar_prefetch = 0 : i64, scratch_operands = 1 : i64, tpu.core_type = #tpu.core_type<tc>, window_params = [{transform_indices = @transform_0, window_bounds = array<i64: 1, 320, 196>}, {transform_indices = @transform_1, window_bounds = array<i64: 1, 1, 160, 320>}, {transform_indices = @transform_2, window_bounds = array<i64: 1, 160, 196>}]} {
    %c0_i32 = arith.constant 0 : i32
    %0 = arith.cmpi eq, %arg2, %c0_i32 : i32
    %1 = arith.extui %0 : i1 to i32
    %c0_i32_0 = arith.constant 0 : i32
    %2 = arith.cmpi ne, %1, %c0_i32_0 : i32
    scf.if %2 {
      %cst_12 = arith.constant 0.000000e+00 : f32
      %14 = vector.broadcast %cst_12 : f32 to vector<160x196xf32>
      %c0_13 = arith.constant 0 : index
      %c0_14 = arith.constant 0 : index
      %15 = vector.load %arg6[%c0_13, %c0_14] : memref<160x196xf32, #tpu.memory_space<vmem>>, vector<160x196xf32>
      tpu.vector_store %arg6[%c0_13, %c0_14], %14 {strides = array<i32>} : memref<160x196xf32, #tpu.memory_space<vmem>>, vector<160x196xf32>,
    } else {
    }
    %c0 = arith.constant 0 : index
    %c0_1 = arith.constant 0 : index
    %c0_2 = arith.constant 0 : index
    %3 = vector.load %arg3[%c0, %c0_1, %c0_2] : memref<1x320x196xf32, #tpu.memory_space<vmem>>, vector<1x320x196xf32>
    %4 = vector.shape_cast %3 : vector<1x320x196xf32> to vector<320x196xf32>
    %c0_3 = arith.constant 0 : index
    %c0_4 = arith.constant 0 : index
    %5 = vector.load %arg6[%c0_3, %c0_4] : memref<160x196xf32, #tpu.memory_space<vmem>>, vector<160x196xf32>
    %c0_5 = arith.constant 0 : index
    %c0_6 = arith.constant 0 : index
    %c0_7 = arith.constant 0 : index
    %c0_8 = arith.constant 0 : index
    %6 = vector.load %arg4[%c0_5, %c0_6, %c0_7, %c0_8] : memref<1x1x160x320xf32, #tpu.memory_space<vmem>>, vector<1x1x160x320xf32>
    %7 = vector.shape_cast %6 : vector<1x1x160x320xf32> to vector<160x320xf32>
    %cst = arith.constant dense<0.000000e+00> : vector<160x196xf32>
    %8 = tpu.matmul %7, %4, %cst {dimension_numbers = #tpu.dot_dimension_numbers<[1], [0], [0], [1], [0, 0, 1, 1], [], []>} : vector<160x320xf32>, vector<320x196xf32>, vector<160x196xf32> -> vector<160x196xf32>
    %9 = arith.addf %5, %8 : vector<160x196xf32>
    %c0_9 = arith.constant 0 : index
    %c0_10 = arith.constant 0 : index
    %10 = vector.load %arg6[%c0_9, %c0_10] : memref<160x196xf32, #tpu.memory_space<vmem>>, vector<160x196xf32>
    tpu.vector_store %arg6[%c0_9, %c0_10], %9 {strides = array<i32>} : memref<160x196xf32, #tpu.memory_space<vmem>>, vector<160x196xf32>,
    %c2_i32 = arith.constant 2 : i32
    %11 = arith.cmpi eq, %arg2, %c2_i32 : i32
    %12 = arith.extui %11 : i1 to i32
    %c0_i32_11 = arith.constant 0 : i32
    %13 = arith.cmpi ne, %12, %c0_i32_11 : i32
    scf.if %13 {
      %c0_12 = arith.constant 0 : index
      %c0_13 = arith.constant 0 : index
      %14 = vector.load %arg6[%c0_12, %c0_13] : memref<160x196xf32, #tpu.memory_space<vmem>>, vector<160x196xf32>
      %c0_14 = arith.constant 0 : index
      %c0_15 = arith.constant 0 : index
      %c0_16 = arith.constant 0 : index
      %15 = vector.load %arg5[%c0_14, %c0_15, %c0_16] : memref<1x160x196xf32, #tpu.memory_space<vmem>>, vector<1x160x196xf32>
      %16 = vector.shape_cast %15 : vector<1x160x196xf32> to vector<160x196xf32>
      %17 = vector.shape_cast %14 : vector<160x196xf32> to vector<1x160x196xf32>
      tpu.vector_store %arg5[%c0_14, %c0_15, %c0_16], %17 {strides = array<i32>} : memref<1x160x196xf32, #tpu.memory_space<vmem>>, vector<1x160x196xf32>,
    } else {
    }
    return
  }
  func.func @transform_0(%arg0: i32, %arg1: i32, %arg2: i32) -> (i32, i32, i32) {
    %c0_i32 = arith.constant 0 : i32
    %c0_i32_0 = arith.constant 0 : i32
    return %arg0, %arg2, %c0_i32 : i32, i32, i32
  }
  func.func @transform_1(%arg0: i32, %arg1: i32, %arg2: i32) -> (i32, i32, i32, i32) {
    %c0_i32 = arith.constant 0 : i32
    %c0_i32_0 = arith.constant 0 : i32
    %c0_i32_1 = arith.constant 0 : i32
    return %arg1, %arg2, %c0_i32, %c0_i32_0 : i32, i32, i32, i32
  }
  func.func @transform_2(%arg0: i32, %arg1: i32, %arg2: i32) -> (i32, i32, i32) {
    %c0_i32 = arith.constant 0 : i32
    %c0_i32_0 = arith.constant 0 : i32
    return %arg0, %arg1, %c0_i32 : i32, i32, i32
  }
}

</mosaic_0001>

<bundles_post_ra>
// kernel: tpu_custom_call.1
= control target key start
LH: loop header
LB: loop body
LE: loop exit
PB: predicated region body
PF: predicated region fallthrough
CT: control target
= control target key end

     0   :  { %7 = vsyncpa [#allocation4], 0  ;;  %s1396_s9 = smov 0   ;;  %s1398_s10 = smov 0   ;;  %s1802_s0 = inlined_call_operand.vmem [shape: f32[1,960,196], index: 0, kind: input, shape index: {}]   ;;  %s1803_s1 = inlined_call_operand.vmem [shape: f32[1,3,160,320], index: 1, kind: input, shape index: {}]   ;;  %s1804_s2 = inlined_call_operand.hbm [shape: f32[1,160,196], index: 2, kind: output, shape index: {}]  }
   0x1   :  { %s1400_s11 = smov 0  }
   0x2 LB: > { %s1132_s12 = sadd.s32 4294967295, %s1374_s11   ;;  %s25_s13 = sadd.s32 1, %s1370_s10  ;;  %s1374_s11 = sphi %s1400_s11, %s13_s11   ;;  %s1370_s10 = sphi %s1398_s10, %s1807_s10   ;;  %s1366_s9 = sphi %s1396_s9, %s1806_s9  }
   0x3   : > { %p26_p0 = scmp.ge.s32.totalorder %s25_s13, 3  ;;  %p1135_p1 = scmp.ge.s32.totalorder %s1374_s11, 1 }
   0x4   : > { %p158_p2 = scmp.lt.s32.totalorder %s1374_s11, 4 }
   0x5   : > { %s1809_s13 = smov (%p26_p0, %s25_s13), 0 }
   0x6   : > { %p159_p3 = pnand %p1135_p1, %p158_p2 }
   0x7   : > { %s189_s14 = smul.u32 (!%p159_p3), 40, %s1366_s9  ;;  %p202_p4 = scmp.lt.s32.totalorder (!%p159_p3), %s1366_s9, 2 }
   0x8   : > { %162 = sbr.rel (%p159_p3) target bundleno = 433 (0x1b1), region = 28  ;;  %p1139_p6 = scmp.ne.s32.totalorder (!%p159_p3), %s1366_s9, 0 }
   0x9   : > { %p192_p5 = scmp.lt.s32.totalorder (!%p159_p3), %s189_s14, 119 }
   0xf   : > { %s203_s15 = scalar_select %p202_p4, %s1366_s9, 2 }
  0x10   : > { %s1811_s14 = smov (!%p192_p5, %s189_s14), 119  ;;  %213 = sbr.rel (%p1139_p6) target bundleno = 38 (0x26), region = 32 }
  0x11   : > { %s1286_s16 = smul.u32 480, %s203_s15  ;;  %s1165_s17 = sshll.u32 %s1811_s14, 4  ;;  %vm215_vm0 = vcmask (!%p1139_p6), 556032   ;;  %v1376_v0 = vmov (!%p1139_p6), 0.0  }
  0x12   : > { %s1423_s20 = scalar_lea.vmem %s1802_s0, %s1165_s17  ;;  %214 = vst [vmem:[#allocation2] sm:$0xff] (!%p1139_p6), %v1376_v0  ;;  %217 = vst [vmem:[#allocation2 + $0x10] sm:$0xff] (!%p1139_p6), %v1376_v0 }
  0x13   : > { %s1428_s23 = scalar_lea.vmem %s1803_s1, %s1286_s16  ;;  %219 = vst [vmem:[#allocation2 + $0x20] sm:$0xff] (!%p1139_p6), %v1376_v0  ;;  %221 = vst [vmem:[#allocation2 + $0x30] sm:$0xff] (!%p1139_p6), %v1376_v0 }
  0x14   : > { %223 = vst [vmem:[#allocation2 + $0x40] sm:$0xff] (!%p1139_p6), %v1376_v0  ;;  %225 = vst [vmem:[#allocation2 + $0x50] sm:$0xff] (!%p1139_p6), %v1376_v0 }
  0x15   : > { %227 = vst [vmem:[#allocation2 + $0x60] sm:$0xff] (!%p1139_p6), %v1376_v0  ;;  %229 = vst [vmem:[#allocation2 + $0x70] sm:$0xff] (!%p1139_p6), %v1376_v0 }
  0x16   : > { %231 = vst [vmem:[#allocation2 + $0x80] sm:$0xff] (!%p1139_p6), %v1376_v0  ;;  %233 = vst [vmem:[#allocation2 + $0x90] sm:$0xff] (!%p1139_p6), %v1376_v0 }
  0x17   : > { %235 = vst [vmem:[#allocation2 + $0xa0] sm:$0xff] %v1376_v0  ;;  %237 = vst [vmem:[#allocation2 + $0xb0] sm:$0xff] %v1376_v0 }
  0x18   : > { %239 = vst [vmem:[#allocation2 + $0xc0] sm:$0xff] %v1376_v0  ;;  %241 = vst [vmem:[#allocation2 + $0xd0] sm:$0xff] %v1376_v0 }
  0x19   : > { %243 = vst [vmem:[#allocation2 + $0xe0] sm:$0xff] %v1376_v0  ;;  %245 = vst [vmem:[#allocation2 + $0xf0] sm:$0xff] %v1376_v0 }
  0x1a   : > { %247 = vst [vmem:[#allocation2 + $0x100] sm:$0xff] %v1376_v0  ;;  %249 = vst [vmem:[#allocation2 + $0x110] sm:$0xff] %v1376_v0 }
  0x1b   : > { %251 = vst [vmem:[#allocation2 + $0x120] sm:$0xff] %v1376_v0  ;;  %253 = vst [vmem:[#allocation2 + $0x130] sm:$0xff] %v1376_v0 }
  0x1c   : > { %216 = vst.msk [vmem:[#allocation2 + $0x8] sm:$0xff] %vm215_vm0, %v1376_v0  ;;  %218 = vst.msk [vmem:[#allocation2 + $0x18] sm:$0xff] %vm215_vm0, %v1376_v0 }
  0x1d   : > { %220 = vst.msk [vmem:[#allocation2 + $0x28] sm:$0xff] %vm215_vm0, %v1376_v0  ;;  %222 = vst.msk [vmem:[#allocation2 + $0x38] sm:$0xff] %vm215_vm0, %v1376_v0 }
  0x1e   : > { %224 = vst.msk [vmem:[#allocation2 + $0x48] sm:$0xff] %vm215_vm0, %v1376_v0  ;;  %226 = vst.msk [vmem:[#allocation2 + $0x58] sm:$0xff] %vm215_vm0, %v1376_v0 }
  0x1f   : > { %228 = vst.msk [vmem:[#allocation2 + $0x68] sm:$0xff] %vm215_vm0, %v1376_v0  ;;  %230 = vst.msk [vmem:[#allocation2 + $0x78] sm:$0xff] %vm215_vm0, %v1376_v0 }
  0x20   : > { %232 = vst.msk [vmem:[#allocation2 + $0x88] sm:$0xff] %vm215_vm0, %v1376_v0  ;;  %234 = vst.msk [vmem:[#allocation2 + $0x98] sm:$0xff] %vm215_vm0, %v1376_v0 }
  0x21   : > { %236 = vst.msk [vmem:[#allocation2 + $0xa8] sm:$0xff] %vm215_vm0, %v1376_v0  ;;  %238 = vst.msk [vmem:[#allocation2 + $0xb8] sm:$0xff] %vm215_vm0, %v1376_v0 }
  0x22   : > { %240 = vst.msk [vmem:[#allocation2 + $0xc8] sm:$0xff] %vm215_vm0, %v1376_v0  ;;  %242 = vst.msk [vmem:[#allocation2 + $0xd8] sm:$0xff] %vm215_vm0, %v1376_v0 }
  0x23   : > { %244 = vst.msk [vmem:[#allocation2 + $0xe8] sm:$0xff] %vm215_vm0, %v1376_v0  ;;  %246 = vst.msk [vmem:[#allocation2 + $0xf8] sm:$0xff] %vm215_vm0, %v1376_v0 }
  0x24   : > { %248 = vst.msk [vmem:[#allocation2 + $0x108] sm:$0xff] %vm215_vm0, %v1376_v0  ;;  %250 = vst.msk [vmem:[#allocation2 + $0x118] sm:$0xff] %vm215_vm0, %v1376_v0 }
  0x25   : > { %252 = vst.msk [vmem:[#allocation2 + $0x128] sm:$0xff] %vm215_vm0, %v1376_v0  ;;  %254 = vst.msk [vmem:[#allocation2 + $0x138] sm:$0xff] %vm215_vm0, %v1376_v0 }
  0x26 PF: > { %v256_v1 = vld [vmem:[%s1423_s20 + $0x8] sm:$0xff]  ;;  %v258_v2 = vld [vmem:[%s1423_s20 + $0x18] sm:$0xff]  ;;  %v255_v3 = vld [vmem:[%s1423_s20] sm:$0xff]  ;;  %v1377_v8 = vmov 0.0   ;;  %vm435_vm1 = vcmask 523264   ;;  %vm907_vm2 = vcmask 556032  }
  0x27   : > { %v1166_v4 = vpack.c.bf16 %v258_v2, %v256_v1  ;;  %v257_v5 = vld [vmem:[%s1423_s20 + $0x10] sm:$0xff]  ;;  %v260_v6 = vld [vmem:[%s1423_s20 + $0x28] sm:$0xff]  ;;  %v262_v7 = vld [vmem:[%s1423_s20 + $0x38] sm:$0xff]  ;;  %745 = vmatprep.mubr.f32.mxu0 %v1377_v8  ;;  %p1160_p7 = scmp.ne.s32.totalorder %s1366_s9, 2 }
  0x28   : > { %v1168_v9 = vpack.c.bf16 %v257_v5, %v255_v3  ;;  %v1170_v10 = vpack.c.bf16 %v262_v7, %v260_v6  ;;  %v259_v11 = vld [vmem:[%s1423_s20 + $0x20] sm:$0xff]  ;;  %v261_v12 = vld [vmem:[%s1423_s20 + $0x30] sm:$0xff]  ;;  %v264_v13 = vld [vmem:[%s1423_s20 + $0x48] sm:$0xff] }
  0x29   : > { %1167 = vmatprep.subr.bf16.mxu1 %v1166_v4  ;;  %v266_v14 = vld [vmem:[%s1423_s20 + $0x58] sm:$0xff]  ;;  %v1172_v15 = vpack.c.bf16 %v261_v12, %v259_v11  ;;  %v263_v17 = vld [vmem:[%s1423_s20 + $0x40] sm:$0xff]  ;;  %v265_v18 = vld [vmem:[%s1423_s20 + $0x50] sm:$0xff] }
  0x2a   : > { %1169 = vmatpush1.bf16.msra.mxu1 %v1168_v9  ;;  %v1174_v16 = vpack.c.bf16 %v266_v14, %v264_v13  ;;  %v268_v19 = vld [vmem:[%s1423_s20 + $0x68] sm:$0xff]  ;;  %v270_v20 = vld [vmem:[%s1423_s20 + $0x78] sm:$0xff]  ;;  %v1176_v21 = vpack.c.bf16 %v265_v18, %v263_v17  ;;  %v267_v23 = vld [vmem:[%s1423_s20 + $0x60] sm:$0xff] }
  0x2b   : > { %1171 = vmatprep.subr.bf16.mxu1 %v1170_v10  ;;  %v1178_v22 = vpack.c.bf16 %v270_v20, %v268_v19  ;;  %v269_v24 = vld [vmem:[%s1423_s20 + $0x70] sm:$0xff]  ;;  %v272_v25 = vld [vmem:[%s1423_s20 + $0x88] sm:$0xff]  ;;  %v274_v26 = vld [vmem:[%s1423_s20 + $0x98] sm:$0xff] }
  0x2c   : > { %v1180_v27 = vpack.c.bf16 %v269_v24, %v267_v23  ;;  %v1182_v28 = vpack.c.bf16 %v274_v26, %v272_v25  ;;  %v271_v29 = vld [vmem:[%s1423_s20 + $0x80] sm:$0xff]  ;;  %v273_v30 = vld [vmem:[%s1423_s20 + $0x90] sm:$0xff]  ;;  %v276_v31 = vld [vmem:[%s1423_s20 + $0xa8] sm:$0xff] }
  0x2d   : > { %v278_v32 = vld [vmem:[%s1423_s20 + $0xb8] sm:$0xff]  ;;  %v1184_v33 = vpack.c.bf16 %v273_v30, %v271_v29  ;;  %v275_v34 = vld [vmem:[%s1423_s20 + $0xa0] sm:$0xff]  ;;  %v320_v35 = vld [vmem:[%s1423_s20 + $0x208] sm:$0xff] }
  0x2e   : > { %1173 = vmatpush1.bf16.msra.mxu1 %v1172_v15  ;;  %v322_v36 = vld [vmem:[%s1423_s20 + $0x218] sm:$0xff]  ;;  %v1186_v37 = vpack.c.bf16 %v278_v32, %v276_v31  ;;  %v277_v38 = vld [vmem:[%s1423_s20 + $0xb0] sm:$0xff]  ;;  %v319_v40 = vld [vmem:[%s1423_s20 + $0x200] sm:$0xff] }
  0x2f   : > { %1175 = vmatprep.subr.bf16.mxu1 %v1174_v16  ;;  %v1230_v39 = vpack.c.bf16 %v322_v36, %v320_v35  ;;  %v321_v41 = vld [vmem:[%s1423_s20 + $0x210] sm:$0xff]  ;;  %v280_v42 = vld [vmem:[%s1423_s20 + $0xc8] sm:$0xff]  ;;  %v282_v43 = vld [vmem:[%s1423_s20 + $0xd8] sm:$0xff]  ;;  %v1188_v47 = vpack.c.bf16 %v277_v38, %v275_v34 }
  0x30   : > { %v1232_v44 = vpack.c.bf16 %v321_v41, %v319_v40  ;;  %v324_v45 = vld [vmem:[%s1423_s20 + $0x228] sm:$0xff]  ;;  %v326_v46 = vld [vmem:[%s1423_s20 + $0x238] sm:$0xff]  ;;  %v279_v48 = vld [vmem:[%s1423_s20 + $0xc0] sm:$0xff]  ;;  %v1190_v52 = vpack.c.bf16 %v282_v43, %v280_v42 }
  0x31   : > { %1231 = vmatprep.subr.bf16.mxu0 %v1230_v39  ;;  %v1234_v49 = vpack.c.bf16 %v326_v46, %v324_v45  ;;  %v323_v50 = vld [vmem:[%s1423_s20 + $0x220] sm:$0xff]  ;;  %v325_v51 = vld [vmem:[%s1423_s20 + $0x230] sm:$0xff]  ;;  %v328_v55 = vld [vmem:[%s1423_s20 + $0x248] sm:$0xff] }
  0x32   : > { %1177 = vmatpush1.bf16.msra.mxu1 %v1176_v21  ;;  %1233 = vmatpush1.bf16.msra.mxu0 %v1232_v44  ;;  %v281_v53 = vld [vmem:[%s1423_s20 + $0xd0] sm:$0xff]  ;;  %v1236_v54 = vpack.c.bf16 %v325_v51, %v323_v50  ;;  %v330_v56 = vld [vmem:[%s1423_s20 + $0x258] sm:$0xff]  ;;  %v284_v57 = vld [vmem:[%s1423_s20 + $0xe8] sm:$0xff] }
  0x33   : > { %1179 = vmatprep.subr.bf16.mxu1 %v1178_v22  ;;  %v286_v58 = vld [vmem:[%s1423_s20 + $0xf8] sm:$0xff]  ;;  %1235 = vmatprep.subr.bf16.mxu0 %v1234_v49  ;;  %v1238_v59 = vpack.c.bf16 %v330_v56, %v328_v55  ;;  %v327_v60 = vld [vmem:[%s1423_s20 + $0x240] sm:$0xff]  ;;  %v329_v61 = vld [vmem:[%s1423_s20 + $0x250] sm:$0xff]  ;;  %v1192_v62 = vpack.c.bf16 %v281_v53, %v279_v48 }
  0x34   : > { %v283_v63 = vld [vmem:[%s1423_s20 + $0xe0] sm:$0xff]  ;;  %v1240_v0 = vpack.c.bf16 %v329_v61, %v327_v60  ;;  %v332_v1 = vld [vmem:[%s1423_s20 + $0x268] sm:$0xff]  ;;  %v334_v2 = vld [vmem:[%s1423_s20 + $0x278] sm:$0xff]  ;;  %v1194_v3 = vpack.c.bf16 %v286_v58, %v284_v57 }
  0x35   : > { %v285_v4 = vld [vmem:[%s1423_s20 + $0xf0] sm:$0xff]  ;;  %v1242_v5 = vpack.c.bf16 %v334_v2, %v332_v1  ;;  %v331_v6 = vld [vmem:[%s1423_s20 + $0x260] sm:$0xff]  ;;  %v288_v9 = vld [vmem:[%s1423_s20 + $0x108] sm:$0xff] }
  0x36   : > { %1181 = vmatpush1.bf16.msra.mxu1 %v1180_v27  ;;  %1237 = vmatpush1.bf16.msra.mxu0 %v1236_v54  ;;  %v333_v7 = vld [vmem:[%s1423_s20 + $0x270] sm:$0xff]  ;;  %v290_v10 = vld [vmem:[%s1423_s20 + $0x118] sm:$0xff]  ;;  %v376_v11 = vld [vmem:[%s1428_s23 + $0x8] sm:$0xff]  ;;  %v1196_v12 = vpack.c.bf16 %v285_v4, %v283_v63 }
  0x37   : > { %1183 = vmatprep.subr.bf16.mxu1 %v1182_v28  ;;  %1239 = vmatprep.subr.bf16.mxu0 %v1238_v59  ;;  %v1244_v13 = vpack.c.bf16 %v333_v7, %v331_v6  ;;  %v1198_v14 = vpack.c.bf16 %v290_v10, %v288_v9  ;;  %v287_v15 = vld [vmem:[%s1423_s20 + $0x100] sm:$0xff]  ;;  %v289_v16 = vld [vmem:[%s1423_s20 + $0x110] sm:$0xff]  ;;  %v292_v17 = vld [vmem:[%s1423_s20 + $0x128] sm:$0xff] }
  0x38   : > { %560 = vmatprep.mubr.f32.mxu1 %v376_v11  ;;  %v294_v18 = vld [vmem:[%s1423_s20 + $0x138] sm:$0xff]  ;;  %v1200_v19 = vpack.c.bf16 %v289_v16, %v287_v15  ;;  %v377_v20 = vld [vmem:[%s1428_s23 + $0x10] sm:$0xff]  ;;  %v291_v22 = vld [vmem:[%s1423_s20 + $0x120] sm:$0xff] }
  0x39   : > { %v1202_v21 = vpack.c.bf16 %v294_v18, %v292_v17  ;;  %v293_v23 = vld [vmem:[%s1423_s20 + $0x130] sm:$0xff]  ;;  %v296_v24 = vld [vmem:[%s1423_s20 + $0x148] sm:$0xff]  ;;  %v298_v25 = vld [vmem:[%s1423_s20 + $0x158] sm:$0xff] }
  0x3a   : > { %1185 = vmatpush1.bf16.msra.mxu1 %v1184_v33  ;;  %1241 = vmatpush1.bf16.msra.mxu0 %v1240_v0  ;;  %v1204_v26 = vpack.c.bf16 %v293_v23, %v291_v22  ;;  %v380_v27 = vld [vmem:[%s1428_s23 + $0x28] sm:$0xff]  ;;  %v1206_v28 = vpack.c.bf16 %v298_v25, %v296_v24  ;;  %v295_v29 = vld [vmem:[%s1423_s20 + $0x140] sm:$0xff]  ;;  %v297_v30 = vld [vmem:[%s1423_s20 + $0x150] sm:$0xff] }
  0x3b   : > { %1187 = vmatprep.subr.bf16.mxu1 %v1186_v37  ;;  %1243 = vmatprep.subr.bf16.mxu0 %v1242_v5  ;;  %v300_v31 = vld [vmem:[%s1423_s20 + $0x168] sm:$0xff]  ;;  %v302_v32 = vld [vmem:[%s1423_s20 + $0x178] sm:$0xff]  ;;  %v1208_v33 = vpack.c.bf16 %v297_v30, %v295_v29  ;;  %v383_v34 = vld [vmem:[%s1428_s23 + $0x40] sm:$0xff] }
  0x3c   : > { %v1210_v35 = vpack.c.bf16 %v302_v32, %v300_v31  ;;  %v299_v36 = vld [vmem:[%s1423_s20 + $0x160] sm:$0xff]  ;;  %v301_v37 = vld [vmem:[%s1423_s20 + $0x170] sm:$0xff]  ;;  %v304_v38 = vld [vmem:[%s1423_s20 + $0x188] sm:$0xff] }
  0x3d   : > { %v306_v39 = vld [vmem:[%s1423_s20 + $0x198] sm:$0xff]  ;;  %v1212_v40 = vpack.c.bf16 %v301_v37, %v299_v36  ;;  %v303_v43 = vld [vmem:[%s1423_s20 + $0x180] sm:$0xff]  ;;  %v305_v44 = vld [vmem:[%s1423_s20 + $0x190] sm:$0xff] }
  0x3e   : > { %1189 = vmatpush1.bf16.msra.mxu1 %v1188_v47  ;;  %1245 = vmatpush1.bf16.msra.mxu0 %v1244_v13  ;;  %v386_v41 = vld [vmem:[%s1428_s23 + $0x58] sm:$0xff]  ;;  %v1214_v42 = vpack.c.bf16 %v306_v39, %v304_v38  ;;  %v308_v45 = vld [vmem:[%s1423_s20 + $0x1a8] sm:$0xff]  ;;  %v1216_v47 = vpack.c.bf16 %v305_v44, %v303_v43  ;;  %v389_v48 = vld [vmem:[%s1428_s23 + $0x70] sm:$0xff] }
  0x3f   : > { %1191 = vmatprep.subr.bf16.mxu1 %v1190_v52  ;;  %v310_v46 = vld [vmem:[%s1423_s20 + $0x1b8] sm:$0xff]  ;;  %v307_v50 = vld [vmem:[%s1423_s20 + $0x1a0] sm:$0xff]  ;;  %v309_v51 = vld [vmem:[%s1423_s20 + $0x1b0] sm:$0xff] }
  0x40   : > { %v1218_v49 = vpack.c.bf16 %v310_v46, %v308_v45  ;;  %v312_v52 = vld [vmem:[%s1423_s20 + $0x1c8] sm:$0xff]  ;;  %v314_v53 = vld [vmem:[%s1423_s20 + $0x1d8] sm:$0xff]  ;;  %v1220_v54 = vpack.c.bf16 %v309_v51, %v307_v50  ;;  %v311_v57 = vld [vmem:[%s1423_s20 + $0x1c0] sm:$0xff] }
  0x41   : > { %1140 = vmatmul.mubr.msk.f32.vlgmr.msra.gmra.mrb[0].mxu0 %vm435_vm1, %v377_v20  ;;  %v392_v55 = vld [vmem:[%s1428_s23 + $0x88] sm:$0xff]  ;;  %v1222_v56 = vpack.c.bf16 %v314_v53, %v312_v52  ;;  %v313_v58 = vld [vmem:[%s1423_s20 + $0x1d0] sm:$0xff]  ;;  %v318_v60 = vld [vmem:[%s1423_s20 + $0x1f8] sm:$0xff] }
  0x42   : > { %1193 = vmatpush1.bf16.msra.mxu1 %v1192_v62  ;;  %751 = vmatprep.mubr.f32.mxu0 %v1377_v8  ;;  %v316_v59 = vld [vmem:[%s1423_s20 + $0x1e8] sm:$0xff]  ;;  %v1224_v61 = vpack.c.bf16 %v313_v58, %v311_v57  ;;  %v395_v62 = vld [vmem:[%s1428_s23 + $0xa0] sm:$0xff]  ;;  %v317_v1 = vld [vmem:[%s1423_s20 + $0x1f0] sm:$0xff] }
  0x43   : > { %1195 = vmatprep.subr.bf16.mxu1 %v1194_v3  ;;  %v1226_v63 = vpack.c.bf16 %v318_v60, %v316_v59  ;;  %v315_v0 = vld [vmem:[%s1423_s20 + $0x1e0] sm:$0xff]  ;;  %v398_v3 = vld [vmem:[%s1428_s23 + $0xb8] sm:$0xff]  ;;  %v401_v5 = vld [vmem:[%s1428_s23 + $0xd0] sm:$0xff] }
  0x44   : > { %v1228_v2 = vpack.c.bf16 %v317_v1, %v315_v0  ;;  %v375_v4 = vld [vmem:[%s1428_s23] sm:$0xff]  ;;  %v378_v7 = vld [vmem:[%s1428_s23 + $0x18] sm:$0xff]  ;;  %v404_v9 = vld [vmem:[%s1428_s23 + $0xe8] sm:$0xff] }
  0x45   : > { %1141 = vmatmul.mubr.msk.f32.gmra.mrb[2].mxu0 %vm435_vm1, %v380_v27  ;;  %v379_v6 = vld [vmem:[%s1428_s23 + $0x20] sm:$0xff]  ;;  %v382_v10 = vld [vmem:[%s1428_s23 + $0x38] sm:$0xff]  ;;  %v381_v11 = vld [vmem:[%s1428_s23 + $0x30] sm:$0xff] }
  0x46   : > { %1197 = vmatpush1.bf16.msra.mxu1 %v1196_v12  ;;  %757 = vmatprep.mubr.f32.mxu0 %v1377_v8  ;;  %v407_v12 = vld [vmem:[%s1428_s23 + $0x100] sm:$0xff]  ;;  %v385_v13 = vld [vmem:[%s1428_s23 + $0x50] sm:$0xff]  ;;  %v410_v15 = vld [vmem:[%s1428_s23 + $0x118] sm:$0xff] }
  0x47   : > { %1199 = vmatprep.subr.bf16.mxu1 %v1198_v14  ;;  %v384_v14 = vld [vmem:[%s1428_s23 + $0x48] sm:$0xff]  ;;  %v387_v17 = vld [vmem:[%s1428_s23 + $0x60] sm:$0xff]  ;;  %v413_v18 = vld [vmem:[%s1428_s23 + $0x130] sm:$0xff] }
  0x48   : > { %v388_v16 = vld [vmem:[%s1428_s23 + $0x68] sm:$0xff]  ;;  %v390_v20 = vld [vmem:[%s1428_s23 + $0x78] sm:$0xff]  ;;  %v393_v23 = vld [vmem:[%s1428_s23 + $0x90] sm:$0xff] }
  0x49   : > { %1142 = vmatmul.mubr.msk.f32.gmra.mrb[4].mxu0 %vm435_vm1, %v383_v34  ;;  %v394_v22 = vld [vmem:[%s1428_s23 + $0x98] sm:$0xff]  ;;  %v419_v24 = vld [vmem:[%s1428_s23 + $0x160] sm:$0xff]  ;;  %v397_v25 = vld [vmem:[%s1428_s23 + $0xb0] sm:$0xff] }
  0x4a   : > { %1201 = vmatpush1.bf16.msra.mxu1 %v1200_v19  ;;  %763 = vmatprep.mubr.f32.mxu0 %v1377_v8  ;;  %v391_v19 = vld [vmem:[%s1428_s23 + $0x80] sm:$0xff]  ;;  %v422_v27 = vld [vmem:[%s1428_s23 + $0x178] sm:$0xff]  ;;  %v425_v30 = vld [vmem:[%s1428_s23 + $0x190] sm:$0xff] }
  0x4b   : > { %1203 = vmatprep.subr.bf16.mxu1 %v1202_v21  ;;  %v416_v21 = vld [vmem:[%s1428_s23 + $0x148] sm:$0xff]  ;;  %v399_v29 = vld [vmem:[%s1428_s23 + $0xc0] sm:$0xff]  ;;  %v402_v32 = vld [vmem:[%s1428_s23 + $0xd8] sm:$0xff] }
  0x4c   : > { %v403_v31 = vld [vmem:[%s1428_s23 + $0xe0] sm:$0xff]  ;;  %v406_v34 = vld [vmem:[%s1428_s23 + $0xf8] sm:$0xff]  ;;  %v409_v37 = vld [vmem:[%s1428_s23 + $0x110] sm:$0xff] }
  0x4d   : > { %1143 = vmatmul.mubr.msk.f32.gmra.mrb[6].mxu0 %vm435_vm1, %v386_v41  ;;  %v431_v36 = vld [vmem:[%s1428_s23 + $0x1c0] sm:$0xff]  ;;  %v408_v38 = vld [vmem:[%s1428_s23 + $0x108] sm:$0xff]  ;;  %v434_v39 = vld [vmem:[%s1428_s23 + $0x1d8] sm:$0xff] }
  0x4e   : > { %1205 = vmatpush1.bf16.msra.mxu1 %v1204_v26  ;;  %769 = vmatprep.mubr.f32.mxu0 %v1377_v8  ;;  %v396_v26 = vld [vmem:[%s1428_s23 + $0xa8] sm:$0xff]  ;;  %v411_v41 = vld [vmem:[%s1428_s23 + $0x120] sm:$0xff]  ;;  %v414_v43 = vld [vmem:[%s1428_s23 + $0x138] sm:$0xff] }
  0x4f   : > { %1207 = vmatprep.subr.bf16.mxu1 %v1206_v28  ;;  %v400_v28 = vld [vmem:[%s1428_s23 + $0xc8] sm:$0xff]  ;;  %v418_v44 = vld [vmem:[%s1428_s23 + $0x158] sm:$0xff]  ;;  %v421_v45 = vld [vmem:[%s1428_s23 + $0x170] sm:$0xff] }
  0x50   : > { %v420_v46 = vld [vmem:[%s1428_s23 + $0x168] sm:$0xff]  ;;  %v426_v50 = vld [vmem:[%s1428_s23 + $0x198] sm:$0xff]  ;;  %v429_v52 = vld [vmem:[%s1428_s23 + $0x1b0] sm:$0xff] }
  0x51   : > { %1144 = vmatmul.mubr.msk.f32.gmra.mrb[8].mxu0 %vm435_vm1, %v389_v48  ;;  %v423_v48 = vld [vmem:[%s1428_s23 + $0x180] sm:$0xff]  ;;  %v430_v51 = vld [vmem:[%s1428_s23 + $0x1b8] sm:$0xff]  ;;  %v433_v53 = vld [vmem:[%s1428_s23 + $0x1d0] sm:$0xff] }
  0x52   : > { %1209 = vmatpush1.bf16.msra.mxu1 %v1208_v33  ;;  %775 = vmatprep.mubr.f32.mxu0 %v1377_v8  ;;  %v428_v33 = vld [vmem:[%s1428_s23 + $0x1a8] sm:$0xff] }
  0x53   : > { %1211 = vmatprep.subr.bf16.mxu1 %v1210_v35  ;;  %v405_v35 = vld [vmem:[%s1428_s23 + $0xf0] sm:$0xff] }
  0x55   : > { %1145 = vmatmul.mubr.msk.f32.gmra.mrb[10].mxu0 %vm435_vm1, %v392_v55 }
  0x56   : > { %1213 = vmatpush1.bf16.msra.mxu1 %v1212_v40  ;;  %781 = vmatprep.mubr.f32.mxu0 %v1377_v8  ;;  %v412_v40 = vld [vmem:[%s1428_s23 + $0x128] sm:$0xff] }
  0x57   : > { %1215 = vmatprep.subr.bf16.mxu1 %v1214_v42  ;;  %v415_v42 = vld [vmem:[%s1428_s23 + $0x140] sm:$0xff] }
  0x59   : > { %1146 = vmatmul.mubr.msk.f32.gmra.mrb[12].mxu0 %vm435_vm1, %v395_v62 }
  0x5a   : > { %1217 = vmatpush1.bf16.msra.mxu1 %v1216_v47  ;;  %787 = vmatprep.mubr.f32.mxu0 %v1377_v8  ;;  %v424_v47 = vld [vmem:[%s1428_s23 + $0x188] sm:$0xff] }
  0x5b   : > { %1219 = vmatprep.subr.bf16.mxu1 %v1218_v49  ;;  %v427_v49 = vld [vmem:[%s1428_s23 + $0x1a0] sm:$0xff] }
  0x5d   : > { %1147 = vmatmul.mubr.msk.f32.gmra.mrb[14].mxu0 %vm435_vm1, %v398_v3 }
  0x5e   : > { %1221 = vmatpush1.bf16.msra.mxu1 %v1220_v54  ;;  %793 = vmatprep.mubr.f32.mxu0 %v1377_v8  ;;  %v432_v54 = vld [vmem:[%s1428_s23 + $0x1c8] sm:$0xff] }
  0x5f   : > { %1223 = vmatprep.subr.bf16.mxu1 %v1222_v56 }
  0x61   : > { %1148 = vmatmul.mubr.msk.f32.gmra.mrb[16].mxu0 %vm435_vm1, %v401_v5 }
  0x62   : > { %1225 = vmatpush1.bf16.msra.mxu1 %v1224_v61  ;;  %799 = vmatprep.mubr.f32.mxu0 %v1377_v8 }
  0x63   : > { %1227 = vmatprep.subr.bf16.mxu1 %v1226_v63 }
  0x65   : > { %1149 = vmatmul.mubr.msk.f32.gmra.mrb[18].mxu0 %vm435_vm1, %v404_v9 }
  0x66   : > { %1229 = vmatpush1.bf16.msra.mxu1 %v1228_v2  ;;  %805 = vmatprep.mubr.f32.mxu0 %v1377_v8 }
  0x69   : > { %561 = vmatmul.mubr.f32.vlgmr.msra.gmra.mrb[0].mxu1 %v375_v4  ;;  %1150 = vmatmul.mubr.msk.f32.gmra.mrb[20].mxu0 %vm435_vm1, %v407_v12  ;;  %v336_v12 = vld [vmem:[#allocation2 + $0x8] sm:$0xff] }
  0x6a   : > { %566 = vmatprep.mubr.f32.mxu1 %v379_v6  ;;  %811 = vmatprep.mubr.f32.mxu0 %v1377_v8 }
  0x6d   : > { %567 = vmatmul.mubr.f32.gmra.mrb[2].mxu1 %v378_v7  ;;  %1151 = vmatmul.mubr.msk.f32.gmra.mrb[22].mxu0 %vm435_vm1, %v410_v15  ;;  %v335_v7 = vld [vmem:[#allocation2] sm:$0xff] }
  0x6e   : > { %572 = vmatprep.mubr.f32.mxu1 %v382_v10  ;;  %817 = vmatprep.mubr.f32.mxu0 %v1377_v8 }
  0x71   : > { %573 = vmatmul.mubr.f32.gmra.mrb[4].mxu1 %v381_v11  ;;  %1152 = vmatmul.mubr.msk.f32.gmra.mrb[24].mxu0 %vm435_vm1, %v413_v18  ;;  %v337_v18 = vld [vmem:[#allocation2 + $0x10] sm:$0xff] }
  0x72   : > { %578 = vmatprep.mubr.f32.mxu1 %v385_v13  ;;  %823 = vmatprep.mubr.f32.mxu0 %v1377_v8 }
  0x75   : > { %579 = vmatmul.mubr.f32.gmra.mrb[6].mxu1 %v384_v14  ;;  %1153 = vmatmul.mubr.msk.f32.gmra.mrb[26].mxu0 %vm435_vm1, %v416_v21 }
  0x76   : > { %584 = vmatprep.mubr.f32.mxu1 %v388_v16  ;;  %829 = vmatprep.mubr.f32.mxu0 %v1377_v8 }
  0x79   : > { %585 = vmatmul.mubr.f32.gmra.mrb[8].mxu1 %v387_v17  ;;  %1154 = vmatmul.mubr.msk.f32.gmra.mrb[28].mxu0 %vm435_vm1, %v419_v24 }
  0x7a   : > { %590 = vmatprep.mubr.f32.mxu1 %v391_v19  ;;  %835 = vmatprep.mubr.f32.mxu0 %v1377_v8 }
  0x7d   : > { %591 = vmatmul.mubr.f32.gmra.mrb[10].mxu1 %v390_v20  ;;  %1155 = vmatmul.mubr.msk.f32.gmra.mrb[30].mxu0 %vm435_vm1, %v422_v27 }
  0x7e   : > { %596 = vmatprep.mubr.f32.mxu1 %v394_v22  ;;  %841 = vmatprep.mubr.f32.mxu0 %v1377_v8  ;;  %v338_v22 = vld [vmem:[#allocation2 + $0x18] sm:$0xff] }
  0x81   : > { %597 = vmatmul.mubr.f32.gmra.mrb[12].mxu1 %v393_v23  ;;  %1156 = vmatmul.mubr.msk.f32.gmra.mrb[32].mxu0 %vm435_vm1, %v425_v30 }
  0x82   : > { %602 = vmatprep.mubr.f32.mxu1 %v397_v25  ;;  %847 = vmatprep.mubr.f32.mxu0 %v1377_v8 }
  0x85   : > { %603 = vmatmul.mubr.f32.gmra.mrb[14].mxu1 %v396_v26  ;;  %1157 = vmatmul.mubr.msk.f32.gmra.mrb[34].mxu0 %vm435_vm1, %v428_v33 }
  0x86   : > { %608 = vmatprep.mubr.f32.mxu1 %v400_v28  ;;  %853 = vmatprep.mubr.f32.mxu0 %v1377_v8  ;;  %v339_v28 = vld [vmem:[#allocation2 + $0x20] sm:$0xff] }
  0x89   : > { %609 = vmatmul.mubr.f32.gmra.mrb[16].mxu1 %v399_v29  ;;  %1158 = vmatmul.mubr.msk.f32.gmra.mrb[36].mxu0 %vm435_vm1, %v431_v36 }
  0x8a   : > { %614 = vmatprep.mubr.f32.mxu1 %v403_v31  ;;  %859 = vmatprep.mubr.f32.mxu0 %v1377_v8  ;;  %v417_v8 = vld [vmem:[%s1428_s23 + $0x150] sm:$0xff] }
  0x8d   : > { %615 = vmatmul.mubr.f32.gmra.mrb[18].mxu1 %v402_v32  ;;  %1159 = vmatmul.mubr.msk.f32.gmra.mrb[38].mxu0 %vm435_vm1, %v434_v39  ;;  %v340_v32 = vld [vmem:[#allocation2 + $0x28] sm:$0xff] }
  0x8e   : > { %620 = vmatprep.mubr.f32.mxu1 %v406_v34 }
  0x91   : > { %621 = vmatmul.mubr.f32.gmra.mrb[20].mxu1 %v405_v35 }
  0x92   : > { %626 = vmatprep.mubr.f32.mxu1 %v409_v37 }
  0x95   : > { %627 = vmatmul.mubr.f32.gmra.mrb[22].mxu1 %v408_v38  ;;  %v341_v38 = vld [vmem:[#allocation2 + $0x30] sm:$0xff] }
  0x96   : > { %632 = vmatprep.mubr.f32.mxu1 %v412_v40 }
  0x99   : > { %633 = vmatmul.mubr.f32.gmra.mrb[24].mxu1 %v411_v41 }
  0x9a   : > { %638 = vmatprep.mubr.f32.mxu1 %v415_v42  ;;  %v342_v42 = vld [vmem:[#allocation2 + $0x38] sm:$0xff] }
  0x9d   : > { %639 = vmatmul.mubr.f32.gmra.mrb[26].mxu1 %v414_v43 }
  0x9e   : > { %644 = vmatprep.mubr.f32.mxu1 %v418_v44 }
  0xa1   : > { %645 = vmatmul.mubr.f32.gmra.mrb[28].mxu1 %v417_v8 }
  0xa2   : > { %650 = vmatprep.mubr.f32.mxu1 %v421_v45 }
  0xa5   : > { %651 = vmatmul.mubr.f32.gmra.mrb[30].mxu1 %v420_v46 }
  0xa6   : > { %656 = vmatprep.mubr.f32.mxu1 %v424_v47  ;;  %v343_v47 = vld [vmem:[#allocation2 + $0x40] sm:$0xff] }
  0xa9   : > { %657 = vmatmul.mubr.f32.gmra.mrb[32].mxu1 %v423_v48 }
  0xaa   : > { %662 = vmatprep.mubr.f32.mxu1 %v427_v49 }
  0xad   : > { %663 = vmatmul.mubr.f32.gmra.mrb[34].mxu1 %v426_v50 }
  0xae   : > { %668 = vmatprep.mubr.f32.mxu1 %v430_v51  ;;  %v344_v51 = vld [vmem:[#allocation2 + $0x48] sm:$0xff] }
  0xb1   : > { %669 = vmatmul.mubr.f32.gmra.mrb[36].mxu1 %v429_v52 }
  0xb2   : > { %674 = vmatprep.mubr.f32.mxu1 %v433_v53 }
  0xb5   : > { %675 = vmatmul.mubr.f32.gmra.mrb[38].mxu1 %v432_v54 }
 0x114   : > { %v747_v55 = vpop.f32.mrb[0].mxu0 }
 0x115   : > { %v749_v56 = vpop.f32.mrb[1].mxu0 }
 0x118   : > { %v753_v57 = vpop.f32.mrb[2].mxu0 }
 0x119   : > { %v755_v58 = vpop.f32.mrb[3].mxu0 }
 0x11c   : > { %v759_v59 = vpop.f32.mrb[4].mxu0 }
 0x11d   : > { %v761_v60 = vpop.f32.mrb[5].mxu0 }
 0x120   : > { %v765_v61 = vpop.f32.mrb[6].mxu0 }
 0x121   : > { %v767_v62 = vpop.f32.mrb[7].mxu0 }
 0x124   : > { %v771_v63 = vpop.f32.mrb[8].mxu0 }
 0x125   : > { %v1631_v0 = vpop.f32.mrb[9].mxu0 }
 0x128   : > { %v1633_v1 = vpop.f32.mrb[10].mxu0 }
 0x129   : > { %v1635_v2 = vpop.f32.mrb[11].mxu0 }
 0x12c   : > { %v1637_v3 = vpop.f32.mrb[12].mxu0 }
 0x12d   : > { %v1639_v4 = vpop.f32.mrb[13].mxu0 }
 0x130   : > { %v1641_v5 = vpop.f32.mrb[14].mxu0 }
 0x131   : > { %v1643_v6 = vpop.f32.mrb[15].mxu0 }
 0x134   : > { %v1645_v10 = vpop.f32.mrb[16].mxu0 }
 0x135   : > { %v1647_v14 = vpop.f32.mrb[17].mxu0 }
 0x138   : > { %v1649_v20 = vpop.f32.mrb[18].mxu0 }
 0x139   : > { %v1651_v24 = vpop.f32.mrb[19].mxu0 }
 0x13c   : > { %v562_v9 = vpop.f32.mrb[0].mxu1  ;;  %v1654_v30 = vpop.f32.mrb[20].mxu0 }
 0x13d   : > { %v748_v11 = vadd.f32 %v747_v55, %v562_v9  ;;  %v564_v13 = vpop.f32.mrb[1].mxu1  ;;  %v1656_v34 = vpop.f32.mrb[21].mxu0 }
 0x13e   : > { %v750_v15 = vadd.f32 %v749_v56, %v564_v13 }
 0x13f   : > { %v866_v16 = vadd.f32 %v748_v11, %v335_v7 }
 0x140   : > { %v867_v17 = vadd.f32 %v750_v15, %v336_v12  ;;  %v568_v19 = vpop.f32.mrb[2].mxu1  ;;  %v1659_v40 = vpop.f32.mrb[22].mxu0 }
 0x141   : > { %906 = vst [vmem:[#allocation2] sm:$0xff] %v866_v16  ;;  %v754_v21 = vadd.f32 %v753_v57, %v568_v19  ;;  %v570_v23 = vpop.f32.mrb[3].mxu1  ;;  %v1661_v44 = vpop.f32.mrb[23].mxu0  ;;  %v345_v57 = vld [vmem:[#allocation2 + $0x50] sm:$0xff]  ;;  %v348_v16 = vld [vmem:[#allocation2 + $0x68] sm:$0xff] }
 0x142   : > { %908 = vst.msk [vmem:[#allocation2 + $0x8] sm:$0xff] %vm907_vm2, %v867_v17  ;;  %v756_v25 = vadd.f32 %v755_v58, %v570_v23 }
 0x143   : > { %v868_v26 = vadd.f32 %v754_v21, %v337_v18 }
 0x144   : > { %v869_v27 = vadd.f32 %v756_v25, %v338_v22  ;;  %v574_v29 = vpop.f32.mrb[4].mxu1  ;;  %v1664_v49 = vpop.f32.mrb[24].mxu0 }
 0x145   : > { %909 = vst [vmem:[#allocation2 + $0x10] sm:$0xff] %v868_v26  ;;  %v760_v31 = vadd.f32 %v759_v59, %v574_v29  ;;  %v576_v33 = vpop.f32.mrb[5].mxu1  ;;  %v1666_v53 = vpop.f32.mrb[25].mxu0  ;;  %v350_v26 = vld [vmem:[#allocation2 + $0x78] sm:$0xff] }
 0x146   : > { %910 = vst.msk [vmem:[#allocation2 + $0x18] sm:$0xff] %vm907_vm2, %v869_v27  ;;  %v762_v35 = vadd.f32 %v761_v60, %v576_v33 }
 0x147   : > { %v870_v36 = vadd.f32 %v760_v31, %v339_v28 }
 0x148   : > { %v871_v37 = vadd.f32 %v762_v35, %v340_v32  ;;  %v580_v39 = vpop.f32.mrb[6].mxu1  ;;  %v1670_v59 = vpop.f32.mrb[26].mxu0 }
 0x149   : > { %911 = vst [vmem:[#allocation2 + $0x20] sm:$0xff] %v870_v36  ;;  %v766_v41 = vadd.f32 %v765_v61, %v580_v39  ;;  %v582_v43 = vpop.f32.mrb[7].mxu1  ;;  %v346_v61 = vld [vmem:[#allocation2 + $0x58] sm:$0xff]  ;;  %v352_v36 = vld [vmem:[#allocation2 + $0x88] sm:$0xff] }
 0x14a   : > { %912 = vst.msk [vmem:[#allocation2 + $0x28] sm:$0xff] %vm907_vm2, %v871_v37  ;;  %v768_v8 = vadd.f32 %v767_v62, %v582_v43 }
 0x14b   : > { %v872_v45 = vadd.f32 %v766_v41, %v341_v38 }
 0x14c   : > { %v873_v46 = vadd.f32 %v768_v8, %v342_v42  ;;  %v586_v48 = vpop.f32.mrb[8].mxu1 }
 0x14d   : > { %913 = vst [vmem:[#allocation2 + $0x30] sm:$0xff] %v872_v45  ;;  %v772_v50 = vadd.f32 %v771_v63, %v586_v48  ;;  %v588_v52 = vpop.f32.mrb[9].mxu1  ;;  %v1673_v63 = vpop.f32.mrb[27].mxu0  ;;  %v354_v45 = vld [vmem:[#allocation2 + $0x98] sm:$0xff] }
 0x14e   : > { %914 = vst.msk [vmem:[#allocation2 + $0x38] sm:$0xff] %vm907_vm2, %v873_v46  ;;  %v774_v54 = vadd.f32 %v1631_v0, %v588_v52  ;;  %v347_v0 = vld [vmem:[#allocation2 + $0x60] sm:$0xff]  ;;  %v1677_v13 = vpop.f32.mrb[28].mxu0 }
 0x14f   : > { %v874_v55 = vadd.f32 %v772_v50, %v343_v47 }
 0x150   : > { %v875_v56 = vadd.f32 %v774_v54, %v344_v51  ;;  %v592_v58 = vpop.f32.mrb[10].mxu1 }
 0x151   : > { %915 = vst [vmem:[#allocation2 + $0x40] sm:$0xff] %v874_v55  ;;  %v778_v60 = vadd.f32 %v1633_v1, %v592_v58  ;;  %v594_v62 = vpop.f32.mrb[11].mxu1  ;;  %v1680_v1 = vpop.f32.mrb[29].mxu0  ;;  %v356_v55 = vld [vmem:[#allocation2 + $0xa8] sm:$0xff] }
 0x152   : > { %916 = vst.msk [vmem:[#allocation2 + $0x48] sm:$0xff] %vm907_vm2, %v875_v56  ;;  %v780_v7 = vadd.f32 %v1635_v2, %v594_v62  ;;  %v349_v2 = vld [vmem:[#allocation2 + $0x70] sm:$0xff]  ;;  %v1684_v23 = vpop.f32.mrb[30].mxu0 }
 0x153   : > { %v876_v9 = vadd.f32 %v778_v60, %v345_v57 }
 0x154   : > { %v877_v11 = vadd.f32 %v780_v7, %v346_v61  ;;  %v598_v12 = vpop.f32.mrb[12].mxu1 }
 0x155   : > { %917 = vst [vmem:[#allocation2 + $0x50] sm:$0xff] %v876_v9  ;;  %v784_v15 = vadd.f32 %v1637_v3, %v598_v12  ;;  %v600_v17 = vpop.f32.mrb[13].mxu1  ;;  %v1687_v3 = vpop.f32.mrb[31].mxu0  ;;  %v358_v9 = vld [vmem:[#allocation2 + $0xb8] sm:$0xff] }
 0x156   : > { %918 = vst.msk [vmem:[#allocation2 + $0x58] sm:$0xff] %vm907_vm2, %v877_v11  ;;  %v786_v18 = vadd.f32 %v1639_v4, %v600_v17  ;;  %v351_v4 = vld [vmem:[#allocation2 + $0x80] sm:$0xff]  ;;  %v1691_v33 = vpop.f32.mrb[32].mxu0 }
 0x157   : > { %v878_v19 = vadd.f32 %v784_v15, %v347_v0 }
 0x158   : > { %v879_v21 = vadd.f32 %v786_v18, %v348_v16  ;;  %v604_v22 = vpop.f32.mrb[14].mxu1  ;;  %v360_v18 = vld [vmem:[#allocation2 + $0xc8] sm:$0xff] }
 0x159   : > { %919 = vst [vmem:[#allocation2 + $0x60] sm:$0xff] %v878_v19  ;;  %v790_v25 = vadd.f32 %v1641_v5, %v604_v22  ;;  %v606_v27 = vpop.f32.mrb[15].mxu1  ;;  %v1694_v5 = vpop.f32.mrb[33].mxu0  ;;  %v361_v22 = vld [vmem:[#allocation2 + $0xd0] sm:$0xff] }
 0x15a   : > { %920 = vst.msk [vmem:[#allocation2 + $0x68] sm:$0xff] %vm907_vm2, %v879_v21  ;;  %v792_v28 = vadd.f32 %v1643_v6, %v606_v27  ;;  %v353_v6 = vld [vmem:[#allocation2 + $0x90] sm:$0xff]  ;;  %v1698_v43 = vpop.f32.mrb[34].mxu0 }
 0x15b   : > { %v880_v29 = vadd.f32 %v790_v25, %v349_v2 }
 0x15c   : > { %v881_v31 = vadd.f32 %v792_v28, %v350_v26  ;;  %v610_v32 = vpop.f32.mrb[16].mxu1  ;;  %v362_v26 = vld [vmem:[#allocation2 + $0xd8] sm:$0xff] }
 0x15d   : > { %921 = vst [vmem:[#allocation2 + $0x70] sm:$0xff] %v880_v29  ;;  %v796_v35 = vadd.f32 %v1645_v10, %v610_v32  ;;  %v612_v37 = vpop.f32.mrb[17].mxu1  ;;  %v1701_v10 = vpop.f32.mrb[35].mxu0  ;;  %v364_v32 = vld [vmem:[#allocation2 + $0xe8] sm:$0xff] }
 0x15e   : > { %922 = vst.msk [vmem:[#allocation2 + $0x78] sm:$0xff] %vm907_vm2, %v881_v31  ;;  %v798_v38 = vadd.f32 %v1647_v14, %v612_v37  ;;  %v355_v14 = vld [vmem:[#allocation2 + $0xa0] sm:$0xff]  ;;  %v1705_v52 = vpop.f32.mrb[36].mxu0 }
 0x15f   : > { %v882_v39 = vadd.f32 %v796_v35, %v351_v4  ;;  %v363_v31 = vld [vmem:[#allocation2 + $0xe0] sm:$0xff] }
 0x160   : > { %v883_v41 = vadd.f32 %v798_v38, %v352_v36  ;;  %v616_v42 = vpop.f32.mrb[18].mxu1  ;;  %v365_v38 = vld [vmem:[#allocation2 + $0xf0] sm:$0xff] }
 0x161   : > { %923 = vst [vmem:[#allocation2 + $0x80] sm:$0xff] %v882_v39  ;;  %v802_v8 = vadd.f32 %v1649_v20, %v616_v42  ;;  %v618_v46 = vpop.f32.mrb[19].mxu1  ;;  %v1708_v20 = vpop.f32.mrb[37].mxu0 }
 0x162   : > { %924 = vst.msk [vmem:[#allocation2 + $0x88] sm:$0xff] %vm907_vm2, %v883_v41  ;;  %v804_v47 = vadd.f32 %v1651_v24, %v618_v46  ;;  %v357_v24 = vld [vmem:[#allocation2 + $0xb0] sm:$0xff]  ;;  %v1712_v62 = vpop.f32.mrb[38].mxu0  ;;  %v366_v41 = vld [vmem:[#allocation2 + $0xf8] sm:$0xff] }
 0x163   : > { %v884_v48 = vadd.f32 %v802_v8, %v353_v6 }
 0x164   : > { %v885_v50 = vadd.f32 %v804_v47, %v354_v45  ;;  %v622_v51 = vpop.f32.mrb[20].mxu1  ;;  %v367_v45 = vld [vmem:[#allocation2 + $0x100] sm:$0xff]  ;;  %v368_v47 = vld [vmem:[#allocation2 + $0x108] sm:$0xff] }
 0x165   : > { %925 = vst [vmem:[#allocation2 + $0x90] sm:$0xff] %v884_v48  ;;  %v808_v54 = vadd.f32 %v1654_v30, %v622_v51  ;;  %v624_v56 = vpop.f32.mrb[21].mxu1  ;;  %v1715_v30 = vpop.f32.mrb[39].mxu0  ;;  %v369_v51 = vld [vmem:[#allocation2 + $0x110] sm:$0xff] }
 0x166   : > { %926 = vst.msk [vmem:[#allocation2 + $0x98] sm:$0xff] %vm907_vm2, %v885_v50  ;;  %v810_v57 = vadd.f32 %v1656_v34, %v624_v56  ;;  %v359_v34 = vld [vmem:[#allocation2 + $0xc0] sm:$0xff] }
 0x167   : > { %v886_v58 = vadd.f32 %v808_v54, %v355_v14 }
 0x168   : > { %v887_v60 = vadd.f32 %v810_v57, %v356_v55  ;;  %v628_v61 = vpop.f32.mrb[22].mxu1  ;;  %v370_v55 = vld [vmem:[#allocation2 + $0x118] sm:$0xff] }
 0x169   : > { %927 = vst [vmem:[#allocation2 + $0xa0] sm:$0xff] %v886_v58  ;;  %v814_v7 = vadd.f32 %v1659_v40, %v628_v61  ;;  %v630_v11 = vpop.f32.mrb[23].mxu1  ;;  %v372_v61 = vld [vmem:[#allocation2 + $0x128] sm:$0xff] }
 0x16a   : > { %928 = vst.msk [vmem:[#allocation2 + $0xa8] sm:$0xff] %vm907_vm2, %v887_v60  ;;  %v816_v0 = vadd.f32 %v1661_v44, %v630_v11  ;;  %v371_v60 = vld [vmem:[#allocation2 + $0x120] sm:$0xff] }
 0x16b   : > { %v888_v12 = vadd.f32 %v814_v7, %v357_v24 }
 0x16c   : > { %v889_v15 = vadd.f32 %v816_v0, %v358_v9  ;;  %v634_v16 = vpop.f32.mrb[24].mxu1  ;;  %v373_v0 = vld [vmem:[#allocation2 + $0x130] sm:$0xff] }
 0x16d   : > { %929 = vst [vmem:[#allocation2 + $0xb0] sm:$0xff] %v888_v12  ;;  %v820_v17 = vadd.f32 %v1664_v49, %v634_v16  ;;  %v636_v19 = vpop.f32.mrb[25].mxu1 }
 0x16e   : > { %930 = vst.msk [vmem:[#allocation2 + $0xb8] sm:$0xff] %vm907_vm2, %v889_v15  ;;  %v822_v40 = vadd.f32 %v1666_v53, %v636_v19  ;;  %v374_v15 = vld [vmem:[#allocation2 + $0x138] sm:$0xff]  ;;  %v953_v19 = vld [vmem:[#allocation2 + $0x10] sm:$0xff] (!%p1160_p7) }
 0x16f   : > { %v890_v21 = vadd.f32 %v820_v17, %v359_v34  ;;  %993 = vst [vmem:[#allocation3 + $0x10] sm:$0xff] (!%p1160_p7), %v953_v19 }
 0x170   : > { %v891_v2 = vadd.f32 %v822_v40, %v360_v18  ;;  %v640_v25 = vpop.f32.mrb[26].mxu1  ;;  %v952_v18 = vld [vmem:[#allocation2 + $0x8] sm:$0xff] (!%p1160_p7)  ;;  %v955_v40 = vld [vmem:[#allocation2 + $0x20] sm:$0xff] (!%p1160_p7) }
 0x171   : > { %931 = vst [vmem:[#allocation2 + $0xc0] sm:$0xff] %v890_v21  ;;  %v826_v44 = vadd.f32 %v1670_v59, %v640_v25  ;;  %v642_v27 = vpop.f32.mrb[27].mxu1  ;;  %992 = vst.msk [vmem:[#allocation3 + $0x8] sm:$0xff] (!%p1160_p7), %vm907_vm2, %v952_v18  ;;  %v956_v21 = vld [vmem:[#allocation2 + $0x28] sm:$0xff] (!%p1160_p7) }
 0x172   : > { %932 = vst.msk [vmem:[#allocation2 + $0xc8] sm:$0xff] %vm907_vm2, %v891_v2  ;;  %v828_v28 = vadd.f32 %v1673_v63, %v642_v27  ;;  %995 = vst [vmem:[#allocation3 + $0x20] sm:$0xff] (!%p1160_p7), %v955_v40  ;;  %v958_v2 = vld [vmem:[#allocation2 + $0x38] sm:$0xff] (!%p1160_p7)  ;;  %v960_v25 = vld [vmem:[#allocation2 + $0x48] sm:$0xff] (!%p1160_p7) }
 0x173   : > { %v892_v49 = vadd.f32 %v826_v44, %v361_v22  ;;  %996 = vst.msk [vmem:[#allocation3 + $0x28] sm:$0xff] (!%p1160_p7), %vm907_vm2, %v956_v21  ;;  %v959_v22 = vld [vmem:[#allocation2 + $0x40] sm:$0xff] (!%p1160_p7)  ;;  %998 = vst.msk [vmem:[#allocation3 + $0x38] sm:$0xff] (!%p1160_p7), %vm907_vm2, %v958_v2  ;;  %v961_v44 = vld [vmem:[#allocation2 + $0x50] sm:$0xff] (!%p1160_p7) }
 0x174   : > { %v893_v29 = vadd.f32 %v828_v28, %v362_v26  ;;  %v646_v4 = vpop.f32.mrb[28].mxu1  ;;  %999 = vst [vmem:[#allocation3 + $0x40] sm:$0xff] (!%p1160_p7), %v959_v22  ;;  %v962_v26 = vld [vmem:[#allocation2 + $0x58] sm:$0xff] (!%p1160_p7)  ;;  %1000 = vst.msk [vmem:[#allocation3 + $0x48] sm:$0xff] (!%p1160_p7), %vm907_vm2, %v960_v25  ;;  %v963_v27 = vld [vmem:[#allocation2 + $0x60] sm:$0xff] (!%p1160_p7) }
 0x175   : > { %933 = vst [vmem:[#allocation2 + $0xd0] sm:$0xff] %v892_v49  ;;  %v832_v53 = vadd.f32 %v1677_v13, %v646_v4  ;;  %v648_v35 = vpop.f32.mrb[29].mxu1  ;;  %1001 = vst [vmem:[#allocation3 + $0x50] sm:$0xff] (!%p1160_p7), %v961_v44  ;;  %v964_v28 = vld [vmem:[#allocation2 + $0x68] sm:$0xff] (!%p1160_p7)  ;;  %v965_v49 = vld [vmem:[#allocation2 + $0x70] sm:$0xff] (!%p1160_p7) }
 0x176   : > { %934 = vst.msk [vmem:[#allocation2 + $0xd8] sm:$0xff] %vm907_vm2, %v893_v29  ;;  %v834_v36 = vadd.f32 %v1680_v1, %v648_v35  ;;  %1002 = vst.msk [vmem:[#allocation3 + $0x58] sm:$0xff] (!%p1160_p7), %vm907_vm2, %v962_v26  ;;  %v966_v29 = vld [vmem:[#allocation2 + $0x78] sm:$0xff] (!%p1160_p7)  ;;  %v968_v4 = vld [vmem:[#allocation2 + $0x88] sm:$0xff] (!%p1160_p7) }
 0x177   : > { %v894_v59 = vadd.f32 %v832_v53, %v363_v31  ;;  %1003 = vst [vmem:[#allocation3 + $0x60] sm:$0xff] (!%p1160_p7), %v963_v27  ;;  %1004 = vst.msk [vmem:[#allocation3 + $0x68] sm:$0xff] (!%p1160_p7), %vm907_vm2, %v964_v28  ;;  %v967_v31 = vld [vmem:[#allocation2 + $0x80] sm:$0xff] (!%p1160_p7)  ;;  %v969_v53 = vld [vmem:[#allocation2 + $0x90] sm:$0xff] (!%p1160_p7) }
 0x178   : > { %v895_v37 = vadd.f32 %v834_v36, %v364_v32  ;;  %v652_v39 = vpop.f32.mrb[30].mxu1  ;;  %1005 = vst [vmem:[#allocation3 + $0x70] sm:$0xff] (!%p1160_p7), %v965_v49  ;;  %1006 = vst.msk [vmem:[#allocation3 + $0x78] sm:$0xff] (!%p1160_p7), %vm907_vm2, %v966_v29  ;;  %v970_v32 = vld [vmem:[#allocation2 + $0x98] sm:$0xff] (!%p1160_p7)  ;;  %v971_v35 = vld [vmem:[#allocation2 + $0xa0] sm:$0xff] (!%p1160_p7) }
 0x179   : > { %935 = vst [vmem:[#allocation2 + $0xe0] sm:$0xff] %v894_v59  ;;  %v838_v63 = vadd.f32 %v1684_v23, %v652_v39  ;;  %v654_v6 = vpop.f32.mrb[31].mxu1  ;;  %1007 = vst [vmem:[#allocation3 + $0x80] sm:$0xff] (!%p1160_p7), %v967_v31  ;;  %v972_v36 = vld [vmem:[#allocation2 + $0xa8] sm:$0xff] (!%p1160_p7)  ;;  %v973_v59 = vld [vmem:[#allocation2 + $0xb0] sm:$0xff] (!%p1160_p7) }
 0x17a   : > { %936 = vst.msk [vmem:[#allocation2 + $0xe8] sm:$0xff] %vm907_vm2, %v895_v37  ;;  %v840_v42 = vadd.f32 %v1687_v3, %v654_v6  ;;  %1008 = vst.msk [vmem:[#allocation3 + $0x88] sm:$0xff] (!%p1160_p7), %vm907_vm2, %v968_v4  ;;  %v974_v37 = vld [vmem:[#allocation2 + $0xb8] sm:$0xff] (!%p1160_p7)  ;;  %v976_v39 = vld [vmem:[#allocation2 + $0xc8] sm:$0xff] (!%p1160_p7) }
 0x17b   : > { %v896_v13 = vadd.f32 %v838_v63, %v365_v38  ;;  %1009 = vst [vmem:[#allocation3 + $0x90] sm:$0xff] (!%p1160_p7), %v969_v53  ;;  %1010 = vst.msk [vmem:[#allocation3 + $0x98] sm:$0xff] (!%p1160_p7), %vm907_vm2, %v970_v32  ;;  %v975_v38 = vld [vmem:[#allocation2 + $0xc0] sm:$0xff] (!%p1160_p7) }
 0x17c   : > { %v897_v8 = vadd.f32 %v840_v42, %v366_v41  ;;  %v658_v46 = vpop.f32.mrb[32].mxu1  ;;  %1011 = vst [vmem:[#allocation3 + $0xa0] sm:$0xff] (!%p1160_p7), %v971_v35  ;;  %1012 = vst.msk [vmem:[#allocation3 + $0xa8] sm:$0xff] (!%p1160_p7), %vm907_vm2, %v972_v36  ;;  %v977_v63 = vld [vmem:[#allocation2 + $0xd0] sm:$0xff] (!%p1160_p7) }
 0x17d   : > { %937 = vst [vmem:[#allocation2 + $0xf0] sm:$0xff] %v896_v13  ;;  %v844_v1 = vadd.f32 %v1691_v33, %v658_v46  ;;  %v660_v48 = vpop.f32.mrb[33].mxu1  ;;  %1013 = vst [vmem:[#allocation3 + $0xb0] sm:$0xff] (!%p1160_p7), %v973_v59  ;;  %v978_v41 = vld [vmem:[#allocation2 + $0xd8] sm:$0xff] (!%p1160_p7) }
 0x17e   : > { %938 = vst.msk [vmem:[#allocation2 + $0xf8] sm:$0xff] %vm907_vm2, %v897_v8  ;;  %v846_v50 = vadd.f32 %v1694_v5, %v660_v48  ;;  %1014 = vst.msk [vmem:[#allocation3 + $0xb8] sm:$0xff] (!%p1160_p7), %vm907_vm2, %v974_v37 }
 0x17f   : > { %v898_v23 = vadd.f32 %v844_v1, %v367_v45  ;;  %1015 = vst [vmem:[#allocation3 + $0xc0] sm:$0xff] (!%p1160_p7), %v975_v38  ;;  %1016 = vst.msk [vmem:[#allocation3 + $0xc8] sm:$0xff] (!%p1160_p7), %vm907_vm2, %v976_v39 }
 0x180   : > { %v899_v14 = vadd.f32 %v846_v50, %v368_v47  ;;  %v664_v54 = vpop.f32.mrb[34].mxu1  ;;  %1017 = vst [vmem:[#allocation3 + $0xd0] sm:$0xff] (!%p1160_p7), %v977_v63  ;;  %v979_v6 = vld [vmem:[#allocation2 + $0xe0] sm:$0xff] (!%p1160_p7)  ;;  %1018 = vst.msk [vmem:[#allocation3 + $0xd8] sm:$0xff] (!%p1160_p7), %vm907_vm2, %v978_v41 }
 0x181   : > { %939 = vst [vmem:[#allocation2 + $0x100] sm:$0xff] %v898_v23  ;;  %v850_v3 = vadd.f32 %v1698_v43, %v664_v54  ;;  %v666_v56 = vpop.f32.mrb[35].mxu1  ;;  %v980_v42 = vld [vmem:[#allocation2 + $0xe8] sm:$0xff] (!%p1160_p7)  ;;  %1019 = vst [vmem:[#allocation3 + $0xe0] sm:$0xff] (!%p1160_p7), %v979_v6 }
 0x182   : > { %940 = vst.msk [vmem:[#allocation2 + $0x108] sm:$0xff] %vm907_vm2, %v899_v14  ;;  %v852_v57 = vadd.f32 %v1701_v10, %v666_v56  ;;  %1020 = vst.msk [vmem:[#allocation3 + $0xe8] sm:$0xff] (!%p1160_p7), %vm907_vm2, %v980_v42 }
 0x183   : > { %v900_v33 = vadd.f32 %v850_v3, %v369_v51 }
 0x184   : > { %v901_v58 = vadd.f32 %v852_v57, %v370_v55  ;;  %v670_v24 = vpop.f32.mrb[36].mxu1  ;;  %v981_v13 = vld [vmem:[#allocation2 + $0xf0] sm:$0xff] (!%p1160_p7) }
 0x185   : > { %941 = vst [vmem:[#allocation2 + $0x110] sm:$0xff] %v900_v33  ;;  %v856_v5 = vadd.f32 %v1705_v52, %v670_v24  ;;  %v672_v7 = vpop.f32.mrb[37].mxu1  ;;  %v982_v8 = vld [vmem:[#allocation2 + $0xf8] sm:$0xff] (!%p1160_p7)  ;;  %1021 = vst [vmem:[#allocation3 + $0xf0] sm:$0xff] (!%p1160_p7), %v981_v13 }
 0x186   : > { %942 = vst.msk [vmem:[#allocation2 + $0x118] sm:$0xff] %vm907_vm2, %v901_v58  ;;  %v858_v9 = vadd.f32 %v1708_v20, %v672_v7  ;;  %v951_v20 = vld [vmem:[#allocation2] sm:$0xff] (!%p1160_p7)  ;;  %1022 = vst.msk [vmem:[#allocation3 + $0xf8] sm:$0xff] (!%p1160_p7), %vm907_vm2, %v982_v8 }
 0x187   : > { %v902_v43 = vadd.f32 %v856_v5, %v371_v60  ;;  %991 = vst [vmem:[#allocation3] sm:$0xff] (!%p1160_p7), %v951_v20 }
 0x188   : > { %v903_v11 = vadd.f32 %v858_v9, %v372_v61  ;;  %v676_v12 = vpop.f32.mrb[38].mxu1  ;;  %950 = sbr.rel (%p1160_p7) target bundleno = 407 (0x197), region = 36  ;;  %v983_v45 = vld [vmem:[#allocation2 + $0x100] sm:$0xff] (!%p1160_p7) }
 0x189   : > { %943 = vst [vmem:[#allocation2 + $0x120] sm:$0xff] %v902_v43  ;;  %v862_v10 = vadd.f32 %v1712_v62, %v676_v12  ;;  %v678_v34 = vpop.f32.mrb[39].mxu1  ;;  %v954_v62 = vld [vmem:[#allocation2 + $0x18] sm:$0xff] (!%p1160_p7)  ;;  %1023 = vst [vmem:[#allocation3 + $0x100] sm:$0xff] (!%p1160_p7), %v983_v45  ;;  %v984_v46 = vld [vmem:[#allocation2 + $0x108] sm:$0xff] (!%p1160_p7) }
 0x18a   : > { %944 = vst.msk [vmem:[#allocation2 + $0x128] sm:$0xff] %vm907_vm2, %v903_v11  ;;  %v864_v16 = vadd.f32 %v1715_v30, %v678_v34  ;;  %994 = vst.msk [vmem:[#allocation3 + $0x18] sm:$0xff] (!%p1160_p7), %vm907_vm2, %v954_v62  ;;  %v957_v30 = vld [vmem:[#allocation2 + $0x30] sm:$0xff] (!%p1160_p7) }
 0x18b   : > { %v904_v52 = vadd.f32 %v862_v10, %v373_v0  ;;  %997 = vst [vmem:[#allocation3 + $0x30] sm:$0xff] (!%p1160_p7), %v957_v30  ;;  %1024 = vst.msk [vmem:[#allocation3 + $0x108] sm:$0xff] (!%p1160_p7), %vm907_vm2, %v984_v46 }
 0x18c   : > { %v905_v17 = vadd.f32 %v864_v16, %v374_v15  ;;  %v985_v1 = vld [vmem:[#allocation2 + $0x110] sm:$0xff] (!%p1160_p7) }
 0x18d   : > { %945 = vst [vmem:[#allocation2 + $0x130] sm:$0xff] %v904_v52  ;;  %v986_v47 = vld [vmem:[#allocation2 + $0x118] sm:$0xff] (!%p1160_p7)  ;;  %1025 = vst [vmem:[#allocation3 + $0x110] sm:$0xff] (!%p1160_p7), %v985_v1 }
 0x18e   : > { %946 = vst.msk [vmem:[#allocation2 + $0x138] sm:$0xff] %vm907_vm2, %v905_v17  ;;  %1026 = vst.msk [vmem:[#allocation3 + $0x118] sm:$0xff] (!%p1160_p7), %vm907_vm2, %v986_v47 }
 0x190   : > { %v987_v48 = vld [vmem:[#allocation2 + $0x120] sm:$0xff] }
 0x191   : > { %v988_v50 = vld [vmem:[#allocation2 + $0x128] sm:$0xff]  ;;  %1027 = vst [vmem:[#allocation3 + $0x120] sm:$0xff] %v987_v48 }
 0x192   : > { %1028 = vst.msk [vmem:[#allocation3 + $0x128] sm:$0xff] %vm907_vm2, %v988_v50 }
 0x194   : > { %v989_v23 = vld [vmem:[#allocation2 + $0x130] sm:$0xff] }
 0x195   : > { %1029 = vst [vmem:[#allocation3 + $0x130] sm:$0xff] %v989_v23  ;;  %v990_v14 = vld [vmem:[#allocation2 + $0x138] sm:$0xff] }
 0x196   : > { %1030 = vst.msk [vmem:[#allocation3 + $0x138] sm:$0xff] %vm907_vm2, %v990_v14 }
 0x197 PF: > { %p1767_p8 = scmp.eq.s32.totalorder %s1132_s12, 2  ;;  %s1378_s25 = smov [#allocation3]  }
 0x198   : > { %s1043_s26 = sshll.u32 %s1378_s25, 4  ;;  %s1044_s26 = int_to_ptr.vmem [resolvable:$true] %s1043_s26 }
 0x199   : > { %s1322_s27 = scalar_lea.vmem %s1044_s26, 5120  ;;  %p1329_p12 = scmp.lt.s32.totalorder %s1044_s26, %s1044_s26 }
 0x19a   : > { %p1323_p9 = scmp.ne.s32.totalorder %s1044_s26, %s1322_s27  ;;  %p1330_p13 = scmp.lt.s32.totalorder %s1322_s27, %s1322_s27 }
 0x19c   : > { %p1324_p10 = pnand %p1323_p9, %p1767_p8  ;;  %p1331_p0 = por %p1330_p13, %p1329_p12 }
 0x19e   : > { %p1325_p11 = pneg %p1324_p10 }
 0x1a0   : > { %p1332_p1 = pnand %p1331_p0, %p1325_p11 }
 0x1a2   : > { %1335 = shalt.err (!%p1332_p1)
}
 0x1a3   : > { %s1336_s30 = scalar_lea.hbm %s1804_s2, 5120 }
 0x1a4   : > { %p1337_p2 = scmp.ne.s32.totalorder %s1804_s2, %s1336_s30  ;;  %p1342_p5 = scmp.lt.u32.totalorder %s1336_s30, %s1804_s2 }
 0x1a6   : > { %p1338_p3 = pnand %p1337_p2, %p1767_p8 }
 0x1a8   : > { %p1339_p4 = pneg %p1338_p3 }
 0x1aa   : > { %p1344_p6 = pnand %p1342_p5, %p1339_p4 }
 0x1ac   : > { %1347 = shalt.err (!%p1344_p6)
}
 0x1ad   : > { %s1379_s7 = smov 256   ;;  %s1380_s8 = smov 16  }
 0x1ae   : > { %1288 = dma.vmem_to_hbm [thread:$0]  (%p1767_p8), %s1044_s26, 5120, %s1804_s2, [#allocation4], %s1379_s7, %s1379_s7, %s1380_s8  }
 0x1af   : > { %1361 = dma.done.wait (%p1767_p8), [#allocation4], 5120  }
 0x1b0   : > { %1363 = vsyncadd (%p1767_p8), [#allocation4], 4294962176 }
 0x1b1 PF: > { %s13_s11 = sadd.s32 1, %s1374_s11   ;;  %s1806_s9 = smov %s1370_s10 }
 0x1b2   : > { %p10_p7 = scmp.ge.s32.totalorder %s13_s11, 5   ;;  %s1807_s10 = smov %s1809_s13 }
 0x1b4   :  { %12 = sbr.rel (!%p10_p7) target bundleno = 2 (0x2), region = 67 }
 0x1bb   :  { %1059 = vsyncpa [#allocation4], 1 }
 0x1bc   :  { %1061 = vsyncpa [#allocation4 + $0x1], 1 }

</bundles_post_ra>
